<compile_context>
chip_gen: v6e
topology: v6e:2x2x1
jax: 0.10.0
libtpu: 0.0.40
codegen_flags: <defaults>
</compile_context>

<pallas_src>
import jax
import jax.numpy as jnp
from jax.experimental import pallas as pl
from jax.experimental.pallas import tpu as pltpu


def _round_up(x, m):
    return (x + m - 1) // m * m


def _discriminator_kernel(z_ref, w1_ref, b1_ref, w2_ref, b2_ref,
                          w3t_ref, b3t_ref, out_ref):
    """One batch tile.

    z_ref   : (TB, Z)   compute dtype (bf16 by default)
    w1_ref  : (Z, 2H)   compute dtype
    b1_ref  : (1, 2H)   f32
    w2_ref  : (2H, H)   compute dtype
    b2_ref  : (1, H)    f32
    w3t_ref : (2, H)    f32  (PyTorch (out, in) layout)
    b3t_ref : (2, 1)    f32
    out_ref : (2, TB)   f32  (batch on lanes -> lane-dense stores)
    """
    # ---- Linear 1 + ReLU (MXU, f32 accumulation) ----
    h1 = jnp.dot(z_ref[...], w1_ref[...], preferred_element_type=jnp.float32)
    h1 = jnp.maximum(h1 + b1_ref[...], 0.0)                     # (TB, 2H) f32

    # ---- Linear 2 + ReLU ----
    h2 = jnp.dot(h1.astype(w2_ref.dtype), w2_ref[...],
                 preferred_element_type=jnp.float32)
    h2 = jnp.maximum(h2 + b2_ref[...], 0.0)                     # (TB, H) f32

    # ---- Linear 3 in transposed layout: logits_t[c, b] = sum_h w3t[c,h]*h2[b,h]
    # (same "lhs @ rhs^T" contraction pattern as flash attention's q @ k^T)
    logits_t = jax.lax.dot_general(
        w3t_ref[...], h2,
        dimension_numbers=(((1,), (1,)), ((), ())),
        preferred_element_type=jnp.float32)                     # (2, TB)
    logits_t = logits_t + b3t_ref[...]                          # (2,1) lane bcast

    # ---- 2-class softmax == sigmoid of the logit difference ----
    # softmax([l0, l1]) = [e/(1+e), 1/(1+e)] with e = exp(l0 - l1)
    d = logits_t[0:1, :] - logits_t[1:2, :]                     # (1, TB)
    e = jnp.exp(d)                                              # EUP
    inv = 1.0 / (1.0 + e)
    out_ref[0:1, :] = (e * inv).astype(out_ref.dtype)           # p(class 0)
    out_ref[1:2, :] = inv.astype(out_ref.dtype)                 # p(class 1)


def discriminator_forward(z, params, *, batch_tile=None,
                          compute_dtype=jnp.bfloat16):
    """Run the discriminator forward pass as a Pallas TPU kernel.

    z: (B, z_size) float32
    params: dict with w1 (Z, 2H), b1 (1, 2H), w2 (2H, H), b2 (1, H),
            w3 (H, 2), b3 (1, 2)   (weights stored as (in, out))
    Returns (B, 2) float32 probabilities.
    """
    z = jnp.asarray(z, jnp.float32)
    B, Z = z.shape
    H2 = params["w1"].shape[1]
    H = params["w2"].shape[1]
    OUT = params["w3"].shape[1]

    # --- batch tiling: lane-aligned tiles, many grid steps for pipelining ---
    if batch_tile is None:
        batch_tile = min(512, _round_up(B, 128))
    batch_tile = _round_up(batch_tile, 128)
    B_pad = _round_up(B, batch_tile)
    if B_pad != B:
        z = jnp.pad(z, ((0, B_pad - B), (0, 0)))   # zero rows, sliced off later
    grid = (B_pad // batch_tile,)

    # bf16 operands for the MXU (halves HBM traffic of the dominant z stream);
    # biases / layer-3 params / accumulation stay f32.
    z_c = z.astype(compute_dtype)
    w1 = params["w1"].astype(compute_dtype)
    w2 = params["w2"].astype(compute_dtype)
    b1 = params["b1"].astype(jnp.float32)
    b2 = params["b2"].astype(jnp.float32)
    w3_t = params["w3"].astype(jnp.float32).T                # (OUT, H)
    b3_t = params["b3"].astype(jnp.float32).reshape(OUT, 1)  # (OUT, 1)

    # Weights/biases are tiny; present the full arrays at every grid step.
    full = lambda shape: pl.BlockSpec(shape, lambda i: (0,) * len(shape))

    out_t = pl.pallas_call(
        _discriminator_kernel,
        out_shape=jax.ShapeDtypeStruct((OUT, B_pad), jnp.float32),
        grid_spec=pltpu.PrefetchScalarGridSpec(
            num_scalar_prefetch=0,
            grid=grid,
            in_specs=[
                pl.BlockSpec((batch_tile, Z), lambda i: (i, 0)),  # z tile
                full((Z, H2)),    # w1
                full((1, H2)),    # b1
                full((H2, H)),    # w2
                full((1, H)),     # b2
                full((OUT, H)),   # w3 (transposed, PyTorch layout)
                full((OUT, 1)),   # b3 (column)
            ],
            out_specs=pl.BlockSpec((OUT, batch_tile), lambda i: (0, i)),
        ),
        compiler_params=pltpu.CompilerParams(
            dimension_semantics=("parallel",)),
    )(z_c, w1, b1, w2, b2, w3_t, b3_t)

    # (OUT, B_pad) -> (B, OUT); tiny 2-row transpose in the wrapper.
    return out_t[:, :B].T


def init_params(key, z_size, hidden_size):
    """Deterministic synthetic parameters matching nn.Linear shapes
    (stored transposed: (in, out))."""
    ks = jax.random.split(key, 6)

    def linear(kw, kb, fan_in, fan_out):
        bound = 1.0 / jnp.sqrt(fan_in)
        w = jax.random.uniform(kw, (fan_in, fan_out), jnp.float32, -bound, bound)
        b = jax.random.uniform(kb, (1, fan_out), jnp.float32, -bound, bound)
        return w, b

    w1, b1 = linear(ks[0], ks[1], z_size, hidden_size * 2)
    w2, b2 = linear(ks[2], ks[3], hidden_size * 2, hidden_size)
    w3, b3 = linear(ks[4], ks[5], hidden_size, 2)
    return {"w1": w1, "b1": b1, "w2": w2, "b2": b2, "w3": w3, "b3": b3}


def reference_forward(z, p, compute_dtype=jnp.float32):
    """Pure-JAX reference; optionally mirrors the kernel's bf16 matmul casts."""
    z_c = z.astype(compute_dtype)
    w1 = p["w1"].astype(compute_dtype)
    w2 = p["w2"].astype(compute_dtype)
    h1 = jnp.maximum(
        jnp.dot(z_c, w1, preferred_element_type=jnp.float32) + p["b1"], 0.0)
    h2 = jnp.maximum(
        jnp.dot(h1.astype(compute_dtype), w2,
                preferred_element_type=jnp.float32) + p["b2"], 0.0)
    logits = jnp.dot(h2, p["w3"], preferred_element_type=jnp.float32) + p["b3"]
    return jax.nn.softmax(logits, axis=-1)


if __name__ == "__main__":
    key = jax.random.PRNGKey(0)
    k_z, k_p = jax.random.split(key)

    B, Z_SIZE, HIDDEN = 8, 32, 32  # small shapes consistent with the module
    z = jax.random.normal(k_z, (B, Z_SIZE), jnp.float32)
    params = init_params(k_p, Z_SIZE, HIDDEN)

    out = jax.block_until_ready(discriminator_forward(z, params))

    ref_mirror = reference_forward(z, params, compute_dtype=jnp.bfloat16)
    ref_f32 = reference_forward(z, params, compute_dtype=jnp.float32)

    assert out.shape == (B, 2)
    # probabilities sum to 1
    assert jnp.allclose(jnp.sum(out, axis=-1), 1.0, atol=1e-5)
    # tight check against a reference that mirrors the bf16 matmul casts
    assert jnp.allclose(out, ref_mirror, atol=1e-3, rtol=1e-3), \
        "mismatch vs bf16-mirrored reference"
    # loose sanity check against the pure-f32 reference
    assert jnp.allclose(out, ref_f32, atol=5e-2, rtol=5e-2), \
        "mismatch vs f32 reference"

    print("KERNEL_OK")
</pallas_src>

<mosaic_0001>
module attributes {stable_mosaic.version = 11 : i64} {
  func.func @_discriminator_kernel(%arg0: i32, %arg1: memref<128x32xbf16, #tpu.memory_space<vmem>>, %arg2: memref<32x64xbf16, #tpu.memory_space<vmem>>, %arg3: memref<1x64xf32, #tpu.memory_space<vmem>>, %arg4: memref<64x32xbf16, #tpu.memory_space<vmem>>, %arg5: memref<1x32xf32, #tpu.memory_space<vmem>>, %arg6: memref<2x32xf32, #tpu.memory_space<vmem>>, %arg7: memref<2x1xf32, #tpu.memory_space<vmem>>, %arg8: memref<2x128xf32, #tpu.memory_space<vmem>>) attributes {dimension_semantics = [#tpu.dimension_semantics<parallel>], iteration_bounds = array<i64: 1>, scalar_prefetch = 0 : i64, scratch_operands = 0 : i64, tpu.core_type = #tpu.core_type<tc>, window_params = [{transform_indices = @transform_0, window_bounds = array<i64: 128, 32>}, {pipeline_mode = #tpu.pipeline_mode<synchronous>, transform_indices = @transform_1, window_bounds = array<i64: 32, 64>}, {pipeline_mode = #tpu.pipeline_mode<synchronous>, transform_indices = @transform_2, window_bounds = array<i64: 1, 64>}, {pipeline_mode = #tpu.pipeline_mode<synchronous>, transform_indices = @transform_3, window_bounds = array<i64: 64, 32>}, {pipeline_mode = #tpu.pipeline_mode<synchronous>, transform_indices = @transform_4, window_bounds = array<i64: 1, 32>}, {pipeline_mode = #tpu.pipeline_mode<synchronous>, transform_indices = @transform_5, window_bounds = array<i64: 2, 32>}, {pipeline_mode = #tpu.pipeline_mode<synchronous>, transform_indices = @transform_6, window_bounds = array<i64: 2, 1>}, {transform_indices = @transform_7, window_bounds = array<i64: 2, 128>}]} {
    %c0 = arith.constant 0 : index
    %c0_0 = arith.constant 0 : index
    %0 = vector.load %arg1[%c0, %c0_0] : memref<128x32xbf16, #tpu.memory_space<vmem>>, vector<128x32xbf16>
    %c0_1 = arith.constant 0 : index
    %c0_2 = arith.constant 0 : index
    %1 = vector.load %arg2[%c0_1, %c0_2] : memref<32x64xbf16, #tpu.memory_space<vmem>>, vector<32x64xbf16>
    %cst = arith.constant dense<0.000000e+00> : vector<128x64xf32>
    %2 = tpu.matmul %0, %1, %cst {dimension_numbers = #tpu.dot_dimension_numbers<[1], [0], [0], [1], [0, 0, 1, 1], [], []>} : vector<128x32xbf16>, vector<32x64xbf16>, vector<128x64xf32> -> vector<128x64xf32>
    %c0_3 = arith.constant 0 : index
    %c0_4 = arith.constant 0 : index
    %3 = vector.load %arg3[%c0_3, %c0_4] : memref<1x64xf32, #tpu.memory_space<vmem>>, vector<1x64xf32>
    %4 = vector.broadcast %3 : vector<1x64xf32> to vector<128x64xf32>
    %5 = arith.addf %2, %4 : vector<128x64xf32>
    %cst_5 = arith.constant 0.000000e+00 : f32
    %6 = vector.broadcast %cst_5 : f32 to vector<128x64xf32>
    %7 = arith.maximumf %5, %6 : vector<128x64xf32>
    %8 = arith.truncf %7 : vector<128x64xf32> to vector<128x64xbf16>
    %c0_6 = arith.constant 0 : index
    %c0_7 = arith.constant 0 : index
    %9 = vector.load %arg4[%c0_6, %c0_7] : memref<64x32xbf16, #tpu.memory_space<vmem>>, vector<64x32xbf16>
    %cst_8 = arith.constant dense<0.000000e+00> : vector<128x32xf32>
    %10 = tpu.matmul %8, %9, %cst_8 {dimension_numbers = #tpu.dot_dimension_numbers<[1], [0], [0], [1], [0, 0, 1, 1], [], []>} : vector<128x64xbf16>, vector<64x32xbf16>, vector<128x32xf32> -> vector<128x32xf32>
    %c0_9 = arith.constant 0 : index
    %c0_10 = arith.constant 0 : index
    %11 = vector.load %arg5[%c0_9, %c0_10] : memref<1x32xf32, #tpu.memory_space<vmem>>, vector<1x32xf32>
    %12 = vector.broadcast %11 : vector<1x32xf32> to vector<128x32xf32>
    %13 = arith.addf %10, %12 : vector<128x32xf32>
    %cst_11 = arith.constant 0.000000e+00 : f32
    %14 = vector.broadcast %cst_11 : f32 to vector<128x32xf32>
    %15 = arith.maximumf %13, %14 : vector<128x32xf32>
    %c0_12 = arith.constant 0 : index
    %c0_13 = arith.constant 0 : index
    %16 = vector.load %arg6[%c0_12, %c0_13] : memref<2x32xf32, #tpu.memory_space<vmem>>, vector<2x32xf32>
    %cst_14 = arith.constant dense<0.000000e+00> : vector<2x128xf32>
    %17 = tpu.matmul %16, %15, %cst_14 {dimension_numbers = #tpu.dot_dimension_numbers<[1], [1], [0], [0], [0, 0, 1, 0], [], []>} : vector<2x32xf32>, vector<128x32xf32>, vector<2x128xf32> -> vector<2x128xf32>
    %c0_15 = arith.constant 0 : index
    %c0_16 = arith.constant 0 : index
    %18 = vector.load %arg7[%c0_15, %c0_16] : memref<2x1xf32, #tpu.memory_space<vmem>>, vector<2x1xf32>
    %19 = vector.broadcast %18 : vector<2x1xf32> to vector<2x128xf32>
    %20 = arith.addf %17, %19 : vector<2x128xf32>
    %21 = vector.extract_strided_slice %20 {offsets = [0, 0], sizes = [1, 128], strides = [1, 1]} : vector<2x128xf32> to vector<1x128xf32>
    %22 = vector.extract_strided_slice %20 {offsets = [1, 0], sizes = [1, 128], strides = [1, 1]} : vector<2x128xf32> to vector<1x128xf32>
    %23 = arith.subf %21, %22 : vector<1x128xf32>
    %24 = math.exp %23 : vector<1x128xf32>
    %cst_17 = arith.constant 1.000000e+00 : f32
    %25 = vector.broadcast %cst_17 : f32 to vector<1x128xf32>
    %26 = arith.addf %25, %24 : vector<1x128xf32>
    %cst_18 = arith.constant 1.000000e+00 : f32
    %27 = vector.broadcast %cst_18 : f32 to vector<1x128xf32>
    %28 = arith.divf %27, %26 : vector<1x128xf32>
    %29 = arith.mulf %24, %28 : vector<1x128xf32>
    %c0_19 = arith.constant 0 : index
    %c0_20 = arith.constant 0 : index
    %30 = vector.load %arg8[%c0_19, %c0_20] : memref<2x128xf32, #tpu.memory_space<vmem>>, vector<1x128xf32>
    tpu.vector_store %arg8[%c0_19, %c0_20], %29 {strides = array<i32>} : memref<2x128xf32, #tpu.memory_space<vmem>>, vector<1x128xf32>,
    %c1 = arith.constant 1 : index
    %c0_21 = arith.constant 0 : index
    %31 = vector.load %arg8[%c1, %c0_21] : memref<2x128xf32, #tpu.memory_space<vmem>>, vector<1x128xf32>
    tpu.vector_store %arg8[%c1, %c0_21], %28 {strides = array<i32>} : memref<2x128xf32, #tpu.memory_space<vmem>>, vector<1x128xf32>,
    return
  }
  func.func @transform_0(%arg0: i32) -> (i32, i32) {
    %c0_i32 = arith.constant 0 : i32
    %c0_i32_0 = arith.constant 0 : i32
    return %arg0, %c0_i32 : i32, i32
  }
  func.func @transform_1(%arg0: i32) -> (i32, i32) {
    %c0_i32 = arith.constant 0 : i32
    %c0_i32_0 = arith.constant 0 : i32
    %c0_i32_1 = arith.constant 0 : i32
    return %c0_i32, %c0_i32_0 : i32, i32
  }
  func.func @transform_2(%arg0: i32) -> (i32, i32) {
    %c0_i32 = arith.constant 0 : i32
    %c0_i32_0 = arith.constant 0 : i32
    %c0_i32_1 = arith.constant 0 : i32
    return %c0_i32, %c0_i32_0 : i32, i32
  }
  func.func @transform_3(%arg0: i32) -> (i32, i32) {
    %c0_i32 = arith.constant 0 : i32
    %c0_i32_0 = arith.constant 0 : i32
    %c0_i32_1 = arith.constant 0 : i32
    return %c0_i32, %c0_i32_0 : i32, i32
  }
  func.func @transform_4(%arg0: i32) -> (i32, i32) {
    %c0_i32 = arith.constant 0 : i32
    %c0_i32_0 = arith.constant 0 : i32
    %c0_i32_1 = arith.constant 0 : i32
    return %c0_i32, %c0_i32_0 : i32, i32
  }
  func.func @transform_5(%arg0: i32) -> (i32, i32) {
    %c0_i32 = arith.constant 0 : i32
    %c0_i32_0 = arith.constant 0 : i32
    %c0_i32_1 = arith.constant 0 : i32
    return %c0_i32, %c0_i32_0 : i32, i32
  }
  func.func @transform_6(%arg0: i32) -> (i32, i32) {
    %c0_i32 = arith.constant 0 : i32
    %c0_i32_0 = arith.constant 0 : i32
    %c0_i32_1 = arith.constant 0 : i32
    return %c0_i32, %c0_i32_0 : i32, i32
  }
  func.func @transform_7(%arg0: i32) -> (i32, i32) {
    %c0_i32 = arith.constant 0 : i32
    %c0_i32_0 = arith.constant 0 : i32
    return %c0_i32, %arg0 : i32, i32
  }
}

</mosaic_0001>

<bundles_post_ra>
// kernel: tpu_custom_call.1
= control target key start
LH: loop header
LB: loop body
LE: loop exit
PB: predicated region body
PF: predicated region fallthrough
CT: control target
= control target key end

     0   :  { %vm107_vm0 = vcmask 261120   ;;  %s956_s0 = inlined_call_operand.vmem [shape: bf16[128,32], index: 0, kind: input, shape index: {}]   ;;  %s957_s1 = inlined_call_operand.vmem [shape: bf16[32,64], index: 1, kind: input, shape index: {}]   ;;  %s958_s2 = inlined_call_operand.vmem [shape: f32[1,64], index: 2, kind: input, shape index: {}]   ;;  %s959_s3 = inlined_call_operand.vmem [shape: bf16[64,32], index: 3, kind: input, shape index: {}]   ;;  %s960_s4 = inlined_call_operand.vmem [shape: f32[1,32], index: 4, kind: input, shape index: {}]   ;;  %s961_s5 = inlined_call_operand.vmem [shape: f32[2,32], index: 5, kind: input, shape index: {}]   ;;  %s962_s6 = inlined_call_operand.vmem [shape: f32[2,1], index: 6, kind: input, shape index: {}]   ;;  %s963_s7 = inlined_call_operand.hbm [shape: f32[2,128], index: 7, kind: output, shape index: {}]  }
   0x1   :  { %v756_v0 = vld [vmem:[%s957_s1 + $0x8] sm:$0xff]   ;;  %v757_v1 = vld [vmem:[%s957_s1] sm:$0xff]   ;;  %v760_v4 = vld [vmem:[%s956_s0 + $0x10] sm:$0xff]  }
   0x2   :  { %672 = vmatprep.subr.bf16.mxu1 %v756_v0  ;;  %v758_v2 = vld [vmem:[%s956_s0] sm:$0xff]   ;;  %v759_v3 = vld [vmem:[%s956_s0 + $0x8] sm:$0xff]   ;;  %v766_v5 = vld [vmem:[%s959_s3 + $0x18] sm:$0xff]  }
   0x3   :  { %673 = vmatpush3.bf16.msra.mxu1 %v756_v0  ;;  %676 = vmatprep.mubr.msk.bf16.mxu1 %vm107_vm0, %v758_v2  ;;  %v767_v6 = vld [vmem:[%s959_s3 + $0x10] sm:$0xff]  }
   0x4   :  { %674 = vmatprep.subr.bf16.mxu1 %v757_v1 }
   0x7   :  { %675 = vmatpush3.bf16.msra.mxu1 %v757_v1 }
   0x8   :  { %692 = vmatprep.subr.bf16.mxu1 %v766_v5 }
   0xa   :  { %677 = vmatmul.mubr.msk.bf16.vlgmr.msra.gmra.mxu1 %vm107_vm0, %v759_v3 }
   0xb   :  { %680 = vmatprep.mubr.msk.bf16.mxu1 %vm107_vm0, %v760_v4  ;;  %693 = vmatpush3.bf16.msra.mxu1 %v766_v5 }
   0xc   :  { %12 = vsyncpa [#allocation3], 0  ;;  %v761_v7 = vld [vmem:[%s956_s0 + $0x18] sm:$0xff]   ;;  %694 = vmatprep.subr.bf16.mxu1 %v767_v6  ;;  %v768_v8 = vld [vmem:[%s959_s3 + $0x8] sm:$0xff]   ;;  %vm292_vm1 = vcmask 523264   ;;  %vm797_vm2 = vmmov 0  }
   0xd   :  { %v762_v9 = vld [vmem:[%s956_s0 + $0x20] sm:$0xff]   ;;  %v763_v10 = vld [vmem:[%s956_s0 + $0x28] sm:$0xff]   ;;  %v764_v11 = vld [vmem:[%s956_s0 + $0x30] sm:$0xff]   ;;  %s799_s8 = smov [#allocation2]  }
   0xe   :  { %v765_v12 = vld [vmem:[%s956_s0 + $0x38] sm:$0xff]   ;;  %v769_v13 = vld [vmem:[%s959_s3] sm:$0xff]   ;;  %s576_s9 = sshll.u32 %s799_s8, 4  ;;  %s577_s9 = int_to_ptr.vmem [resolvable:$true] %s576_s9 }
   0xf   :  { %695 = vmatpush3.bf16.msra.mxu1 %v767_v6  ;;  %v584_v16 = vld [vmem:[%s958_s2] ss:$0 sm:$0xff]  ;;  %p779_p1 = scmp.lt.s32.totalorder %s577_s9, %s577_s9 }
  0x10   :  { %696 = vmatprep.subr.bf16.mxu1 %v768_v8 }
  0x12   :  { %681 = vmatmul.mubr.msk.bf16.gmra.mxu1 %vm107_vm0, %v761_v7  ;;  %v796_v7 = vmov 0.0  }
  0x13   :  { %684 = vmatprep.mubr.msk.bf16.mxu1 %vm107_vm0, %v762_v9  ;;  %697 = vmatpush3.bf16.msra.mxu1 %v768_v8  ;;  %v431_v8 = vld [vmem:[%s962_s6] sm:$0x3]  ;;  %v798_v9 = vmov 0  }
  0x14   :  { %698 = vmatprep.subr.bf16.mxu1 %v769_v13  ;;  %716 = vmatprep.subr.mxu0 %v796_v7 }
  0x15   :  { %748 = vmatprep.mubr.msk.f32.mxu0 %vm797_vm2, %v796_v7  ;;  %755 = vset.pattern.permute.xlu0 %v798_v9 }
  0x16   :  { %434 = vperm.xlu0 %755, %v431_v8  }
  0x17   :  { %699 = vmatpush3.bf16.msra.mxu1 %v769_v13 }
  0x1a   :  { %685 = vmatmul.mubr.msk.bf16.gmra.mxu1 %vm107_vm0, %v763_v10 }
  0x1b   :  { %688 = vmatprep.mubr.msk.bf16.mxu1 %vm107_vm0, %v764_v11 }
  0x22   :  { %689 = vmatmul.mubr.msk.bf16.gmra.mxu1 %vm107_vm0, %v765_v12 }
  0xca   :  { %v678_v14 = vpop.f32.mrf.mxu1 }
  0xcb   :  { %v175_v20 = vadd.f32 %v678_v14, %v584_v16 }
  0xcc   :  { %v166_v15 = vpop.f32.mrf.mxu1 }
  0xcd   :  { %v167_v18 = vadd.f32 %v584_v16, %v166_v15  ;;  %v231_v27 = vmax.f32 %v175_v20, 0.0 }
  0xce   :  { %v679_v17 = vpop.f32.mrf.mxu1 }
  0xcf   :  { %v178_v19 = vadd.f32 %v679_v17, %v584_v16  ;;  %v229_v25 = vmax.f32 %v167_v18, 0.0 }
  0xd0   :  { %v169_v21 = vpop.f32.mrf.mxu1 }
  0xd1   :  { %v170_v22 = vadd.f32 %v584_v16, %v169_v21  ;;  %v232_v23 = vmax.f32 %v178_v19, 0.0 }
  0xd2   :  { %v682_v24 = vpop.f32.mrf.mxu1 }
  0xd3   :  { %v230_v26 = vmax.f32 %v170_v22, 0.0  ;;  %v246_v30 = vpack.c.bf16 %v232_v23, %v231_v27  ;;  %v191_v34 = vadd.f32 %v682_v24, %v584_v16  ;;  %v603_v24 = vld [vmem:[%s960_s4] ss:$0 sm:$0xff] }
  0xd4   :  { %v182_v28 = vpop.f32.mrf.mxu1 }
  0xd5   :  { %v245_v29 = vpack.c.bf16 %v230_v26, %v229_v25  ;;  %v183_v32 = vadd.f32 %v584_v16, %v182_v28  ;;  %v235_v41 = vmax.f32 %v191_v34, 0.0 }
  0xd6   :  { %v683_v31 = vpop.f32.mrf.mxu1 }
  0xd7   :  { %v194_v33 = vadd.f32 %v683_v31, %v584_v16  ;;  %700 = vmatprep.mubr.msk.bf16.mxu1 %vm292_vm1, %v245_v29  ;;  %v233_v39 = vmax.f32 %v183_v32, 0.0 }
  0xd8   :  { %v185_v35 = vpop.f32.mrf.mxu1  ;;  %701 = vmatmul.mubr.msk.bf16.vlgmr.msra.gmra.mxu1 %vm292_vm1, %v246_v30 }
  0xd9   :  { %v186_v36 = vadd.f32 %v584_v16, %v185_v35  ;;  %v236_v37 = vmax.f32 %v194_v33, 0.0 }
  0xda   :  { %v686_v38 = vpop.f32.mrf.mxu1 }
  0xdb   :  { %v234_v40 = vmax.f32 %v186_v36, 0.0  ;;  %v248_v44 = vpack.c.bf16 %v236_v37, %v235_v41  ;;  %v207_v48 = vadd.f32 %v686_v38, %v584_v16 }
  0xdc   :  { %v198_v42 = vpop.f32.mrf.mxu1 }
  0xdd   :  { %v247_v43 = vpack.c.bf16 %v234_v40, %v233_v39  ;;  %v199_v46 = vadd.f32 %v584_v16, %v198_v42  ;;  %v239_v55 = vmax.f32 %v207_v48, 0.0 }
  0xde   :  { %v687_v45 = vpop.f32.mrf.mxu1 }
  0xdf   :  { %v210_v47 = vadd.f32 %v687_v45, %v584_v16  ;;  %704 = vmatprep.mubr.msk.bf16.mxu1 %vm292_vm1, %v247_v43  ;;  %v237_v53 = vmax.f32 %v199_v46, 0.0 }
  0xe0   :  { %v201_v49 = vpop.f32.mrf.mxu1  ;;  %705 = vmatmul.mubr.msk.bf16.gmra.mxu1 %vm292_vm1, %v248_v44 }
  0xe1   :  { %v202_v50 = vadd.f32 %v584_v16, %v201_v49  ;;  %v240_v51 = vmax.f32 %v210_v47, 0.0 }
  0xe2   :  { %v690_v52 = vpop.f32.mrf.mxu1 }
  0xe3   :  { %v238_v54 = vmax.f32 %v202_v50, 0.0  ;;  %v250_v58 = vpack.c.bf16 %v240_v51, %v239_v55  ;;  %v223_v62 = vadd.f32 %v690_v52, %v584_v16 }
  0xe4   :  { %v214_v56 = vpop.f32.mrf.mxu1 }
  0xe5   :  { %v249_v57 = vpack.c.bf16 %v238_v54, %v237_v53  ;;  %v215_v60 = vadd.f32 %v584_v16, %v214_v56  ;;  %v243_v4 = vmax.f32 %v223_v62, 0.0 }
  0xe6   :  { %v691_v59 = vpop.f32.mrf.mxu1 }
  0xe7   :  { %v226_v61 = vadd.f32 %v691_v59, %v584_v16  ;;  %708 = vmatprep.mubr.msk.bf16.mxu1 %vm292_vm1, %v249_v57  ;;  %v241_v2 = vmax.f32 %v215_v60, 0.0  ;;  %v430_v59 = vld [vmem:[%s961_s5] sm:$0x3]  ;;  %v435_v60 = vpop.permute.xlu0 %434  ;;  %s774_s5 = scalar_lea.vmem %s577_s9, 32 }
  0xe8   :  { %v217_v63 = vpop.f32.mrf.mxu1  ;;  %709 = vmatmul.mubr.msk.bf16.gmra.mxu1 %vm292_vm1, %v250_v58  ;;  %p775_p0 = scmp.ne.s32.totalorder %s577_s9, %s774_s5  ;;  %p780_p2 = scmp.lt.s32.totalorder %s774_s5, %s774_s5 }
  0xe9   :  { %v218_v0 = vadd.f32 %v584_v16, %v217_v63  ;;  %v244_v1 = vmax.f32 %v226_v61, 0.0 }
  0xea   :  { %p781_p3 = por %p780_p2, %p779_p1 }
  0xeb   :  { %v242_v3 = vmax.f32 %v218_v0, 0.0  ;;  %v252_v6 = vpack.c.bf16 %v244_v1, %v243_v4 }
  0xec   :  { %p782_p4 = pnand %p781_p3, %p775_p0 }
  0xed   :  { %v251_v5 = vpack.c.bf16 %v242_v3, %v241_v2 }
  0xef   :  { %712 = vmatprep.mubr.msk.bf16.mxu1 %vm292_vm1, %v251_v5 }
  0xf0   :  { %713 = vmatmul.mubr.msk.bf16.gmra.mxu1 %vm292_vm1, %v252_v6 }
 0x198   :  { %v906_v10 = vpop.f32.mrf.mxu1 }
 0x199   :  { %v360_v52 = vadd.f32 %v906_v10, %v603_v24 }
 0x19a   :  { %v908_v11 = vpop.f32.mrf.mxu1 }
 0x19b   :  { %v416_v54 = vmax.f32 %v360_v52, 0.0  ;;  %v352_v56 = vadd.f32 %v603_v24, %v908_v11 }
 0x19c   :  { %v703_v12 = vpop.f32.mrf.mxu1 }
 0x19d   :  { %v363_v50 = vadd.f32 %v703_v12, %v603_v24  ;;  %v414_v58 = vmax.f32 %v352_v56, 0.0 }
 0x19e   :  { %v910_v13 = vpop.f32.mrf.mxu1 }
 0x19f   :  { %v417_v53 = vmax.f32 %v363_v50, 0.0  ;;  %v355_v55 = vadd.f32 %v603_v24, %v910_v13 }
 0x1a0   :  { %v706_v14 = vpop.f32.mrf.mxu1 }
 0x1a1   :  { %v376_v44 = vadd.f32 %v706_v14, %v603_v24  ;;  %v415_v57 = vmax.f32 %v355_v55, 0.0 }
 0x1a2   :  { %v367_v15 = vpop.f32.mrf.mxu1 }
 0x1a3   :  { %v420_v46 = vmax.f32 %v376_v44, 0.0  ;;  %v368_v48 = vadd.f32 %v603_v24, %v367_v15 }
 0x1a4   :  { %v707_v16 = vpop.f32.mrf.mxu1 }
 0x1a5   :  { %v379_v42 = vadd.f32 %v707_v16, %v603_v24  ;;  %v418_v51 = vmax.f32 %v368_v48, 0.0 }
 0x1a6   :  { %v370_v17 = vpop.f32.mrf.mxu1 }
 0x1a7   :  { %v421_v45 = vmax.f32 %v379_v42, 0.0  ;;  %v371_v47 = vadd.f32 %v603_v24, %v370_v17 }
 0x1a8   :  { %v710_v18 = vpop.f32.mrf.mxu1 }
 0x1a9   :  { %v392_v36 = vadd.f32 %v710_v18, %v603_v24  ;;  %v419_v49 = vmax.f32 %v371_v47, 0.0 }
 0x1aa   :  { %v383_v19 = vpop.f32.mrf.mxu1 }
 0x1ab   :  { %v424_v38 = vmax.f32 %v392_v36, 0.0  ;;  %v384_v40 = vadd.f32 %v603_v24, %v383_v19 }
 0x1ac   :  { %v711_v20 = vpop.f32.mrf.mxu1 }
 0x1ad   :  { %v395_v34 = vadd.f32 %v711_v20, %v603_v24  ;;  %v422_v43 = vmax.f32 %v384_v40, 0.0 }
 0x1ae   :  { %v386_v21 = vpop.f32.mrf.mxu1 }
 0x1af   :  { %v425_v37 = vmax.f32 %v395_v34, 0.0  ;;  %v387_v39 = vadd.f32 %v603_v24, %v386_v21 }
 0x1b0   :  { %v714_v22 = vpop.f32.mrf.mxu1 }
 0x1b1   :  { %v408_v27 = vadd.f32 %v714_v22, %v603_v24  ;;  %v423_v41 = vmax.f32 %v387_v39, 0.0 }
 0x1b2   :  { %v399_v23 = vpop.f32.mrf.mxu1 }
 0x1b3   :  { %v428_v30 = vmax.f32 %v408_v27, 0.0  ;;  %v400_v32 = vadd.f32 %v603_v24, %v399_v23 }
 0x1b4   :  { %v715_v25 = vpop.f32.mrf.mxu1 }
 0x1b5   :  { %v411_v26 = vadd.f32 %v715_v25, %v603_v24  ;;  %v426_v35 = vmax.f32 %v400_v32, 0.0 }
 0x1b6   :  { %v402_v29 = vpop.f32.mrf.mxu1 }
 0x1b7   :  { %v429_v28 = vmax.f32 %v411_v26, 0.0  ;;  %v403_v31 = vadd.f32 %v603_v24, %v402_v29 }
 0x1b9   :  { %717 = vmatpush3.xpose.msk.msra.mxu0 %vm107_vm0, %v429_v28  ;;  %v427_v33 = vmax.f32 %v403_v31, 0.0 }
 0x1ba   :  { %718 = vmatprep.subr.mxu0 %v796_v7 }
 0x1bd   :  { %719 = vmatpush3.xpose.msk.msra.mxu0 %vm107_vm0, %v428_v30 }
 0x1be   :  { %720 = vmatprep.subr.mxu0 %v796_v7 }
 0x1c1   :  { %721 = vmatpush3.xpose.msk.msra.mxu0 %vm107_vm0, %v427_v33 }
 0x1c2   :  { %722 = vmatprep.subr.mxu0 %v796_v7 }
 0x1c5   :  { %723 = vmatpush3.xpose.msk.msra.mxu0 %vm107_vm0, %v426_v35 }
 0x1c6   :  { %724 = vmatprep.subr.mxu0 %v796_v7 }
 0x1c9   :  { %725 = vmatpush3.xpose.msk.msra.mxu0 %vm107_vm0, %v425_v37 }
 0x1ca   :  { %726 = vmatprep.subr.mxu0 %v796_v7 }
 0x1cd   :  { %727 = vmatpush3.xpose.msk.msra.mxu0 %vm107_vm0, %v424_v38 }
 0x1ce   :  { %728 = vmatprep.subr.mxu0 %v796_v7 }
 0x1d1   :  { %729 = vmatpush3.xpose.msk.msra.mxu0 %vm107_vm0, %v423_v41 }
 0x1d2   :  { %730 = vmatprep.subr.mxu0 %v796_v7 }
 0x1d5   :  { %731 = vmatpush3.xpose.msk.msra.mxu0 %vm107_vm0, %v422_v43 }
 0x1d6   :  { %732 = vmatprep.subr.mxu0 %v796_v7 }
 0x1d9   :  { %733 = vmatpush3.xpose.msk.msra.mxu0 %vm107_vm0, %v421_v45 }
 0x1da   :  { %734 = vmatprep.subr.mxu0 %v796_v7 }
 0x1dd   :  { %735 = vmatpush3.xpose.msk.msra.mxu0 %vm107_vm0, %v420_v46 }
 0x1de   :  { %736 = vmatprep.subr.mxu0 %v796_v7 }
 0x1e1   :  { %737 = vmatpush3.xpose.msk.msra.mxu0 %vm107_vm0, %v419_v49 }
 0x1e2   :  { %738 = vmatprep.subr.mxu0 %v796_v7 }
 0x1e5   :  { %739 = vmatpush3.xpose.msk.msra.mxu0 %vm107_vm0, %v418_v51 }
 0x1e6   :  { %740 = vmatprep.subr.mxu0 %v796_v7 }
 0x1e9   :  { %741 = vmatpush3.xpose.msk.msra.mxu0 %vm107_vm0, %v417_v53 }
 0x1ea   :  { %742 = vmatprep.subr.mxu0 %v796_v7 }
 0x1ed   :  { %743 = vmatpush3.xpose.msk.msra.mxu0 %vm107_vm0, %v416_v54 }
 0x1ee   :  { %744 = vmatprep.subr.mxu0 %v796_v7 }
 0x1f1   :  { %745 = vmatpush3.xpose.msk.msra.mxu0 %vm107_vm0, %v415_v57 }
 0x1f2   :  { %746 = vmatprep.subr.mxu0 %v796_v7 }
 0x1f5   :  { %747 = vmatpush3.xpose.msk.msra.mxu0 %vm107_vm0, %v414_v58 }
 0x1f8   :  { %749 = vmatmul.mubr.msk.f32.vlgmr.msra.gmra.mxu0 %vm107_vm0, %v430_v59 }
 0x2b8   :  { %v554_v61 = vpop.f32.mrf.mxu0 }
 0x2b9   :  { %v555_v62 = vadd.f32 %v554_v61, %v435_v60 }
 0x2ba   :  { %v750_v63 = vpop.f32.mrf.mxu0 }
 0x2bb   :  { %v559_v0 = vrot.slane %v555_v62, 1 }
 0x2bd   :  { %v561_v1 = vsub.f32 %v555_v62, %v559_v0 }
 0x2bf   :  { %v562_v2 = vmul.f32 1.442695, %v561_v1 }
 0x2c1   :  { %770 = vpow2.f32 %v562_v2 }
 0x2ce   :  { %v771_v3 = vpop.eup %770 }
 0x2cf   :  { %v564_v4 = vadd.f32 1.0, %v771_v3 }
 0x2d1   :  { %772 = vrcp.f32 %v564_v4 }
 0x2de   :  { %v773_v5 = vpop.eup %772 }
 0x2df   :  { %v567_v6 = vmul.f32 %v773_v5, %v771_v3  ;;  %569 = vst [vmem:[#allocation2 + $0x1] sm:$0x1] %v773_v5 }
 0x2e1   :  { %568 = vst [vmem:[#allocation2] sm:$0x1] %v567_v6 }
 0x2e2   :  { %785 = shalt.err (!%p782_p4)
}
 0x2e3   :  { %579 = dma.vmem_to_hbm [thread:$0]  %s577_s9, 32, %s963_s7, [#allocation3]  }
 0x2e4   :  { %794 = dma.done.wait [#allocation3], 32  }
 0x2e5   :  { %795 = vsyncadd [#allocation3], 4294967264 }
 0x2e6   :  { %583 = vsyncpa [#allocation3], 1 }

</bundles_post_ra>
